<compile_context>
chip_gen: v5e
topology: v5e:2x2
jax: 0.10.0
libtpu: 0.0.40
codegen_flags: <defaults>
</compile_context>

<pallas_src>
import functools

import jax
import jax.numpy as jnp
from jax import lax
from jax.experimental import pallas as pl
from jax.experimental.pallas import tpu as pltpu

FEEDBACK_DIM = 20
IN_DIM = FEEDBACK_DIM + 1
HIDDEN = 128

# When the whole batch would fit in one tile but B is at least this big, split
# into >= 2 grid steps so both v7x TensorCores are used under
# dimension_semantics=("parallel",).
_MEGACORE_SPLIT_MIN_B = 4096


def _round_up(x, m):
    return ((x + m - 1) // m) * m


def _vfa_kernel(x_ref, w1_ref, b1_ref, w2_ref, b2_ref, o_ref, *, sub):
    tb = x_ref.shape[0]
    w1 = w1_ref[...]
    b1 = b1_ref[...].astype(jnp.float32)
    w2 = w2_ref[...].astype(jnp.float32)
    b2 = b2_ref[...].astype(jnp.float32)

    def process(start, size):
        x = x_ref[pl.ds(start, size), :]                              # (size, 21)
        # Layer 1 on the MXU, f32 accumulation; bias + ReLU on the VPU.
        h = jnp.dot(x, w1, preferred_element_type=jnp.float32)
        h = jnp.maximum(h + b1, 0.0)                                  # (size, H)
        # Layer 2: (1, H) contracted with (size, H) on the last dim -> (1, size).
        # Result is born lane-dense, so the store into the (1, B) output row is
        # an unmasked vst (for size a multiple of 128).
        out = lax.dot_general(
            w2, h,
            dimension_numbers=(((1,), (1,)), ((), ())),
            preferred_element_type=jnp.float32)                       # (1, size)
        o_ref[:, pl.ds(start, size)] = (out + b2).astype(o_ref.dtype)

    # Sub-chunk loop bounds the live (sub, H) f32 intermediate independently of
    # the (big) DMA tile size.
    n_full = tb // sub
    rem = tb % sub
    if n_full == 1:
        process(0, sub)
    elif n_full > 1:
        def body(s, carry):
            process(pl.multiple_of(s * sub, sub), sub)
            return carry
        lax.fori_loop(0, n_full, body, 0, unroll=True)
    if rem > 0:
        process(n_full * sub, rem)


def vfa_forward(state, w1, b1, w2, b2, *, block_b=8192, sub_b=1024):
    """state: (B, IN_DIM); w1: (IN_DIM, H); b1: (1, H); w2: (1, H); b2: (1, 1).

    Returns (B, 1) float32.  For best HBM throughput pass `state` and `w1` in
    bfloat16 (accumulation is always f32).
    """
    B, in_dim = state.shape
    hidden = w1.shape[1]

    # Batch tile: large enough to amortize per-grid-step overhead, small enough
    # (with the sub-chunk loop) to stay under the 16 MiB scoped-VMEM default on
    # v5e/v6e/v7x.  No padding: the last block may be partial.
    if B > block_b:
        tb = block_b
    elif B >= _MEGACORE_SPLIT_MIN_B:
        tb = _round_up(pl.cdiv(B, 2), 128)   # >= 2 grid steps for v7x megacore
    else:
        tb = B
    num_blocks = pl.cdiv(B, tb)

    itemsize = jnp.dtype(state.dtype).itemsize
    cost = pl.CostEstimate(
        flops=2 * B * in_dim * hidden + 2 * B * hidden,
        transcendentals=0,
        bytes_accessed=(B * in_dim * itemsize                        # x stream
                        + B * 4                                      # output row
                        + in_dim * hidden * jnp.dtype(w1.dtype).itemsize
                        + 2 * hidden * 4 + 4),                       # b1, w2, b2
    )

    kernel = functools.partial(_vfa_kernel, sub=min(sub_b, tb))

    out_row = pl.pallas_call(
        kernel,
        out_shape=jax.ShapeDtypeStruct((1, B), jnp.float32),
        grid=(num_blocks,),
        in_specs=[
            # x: batch-tiled, pipelined / double-buffered.  Last block may be
            # partial; rows are independent and OOB outputs are masked.
            pl.BlockSpec((tb, in_dim), lambda i: (i, 0)),
            # Weights & biases: same block every step -> VMEM-resident.
            pl.BlockSpec(w1.shape, lambda i: (0, 0)),
            pl.BlockSpec(b1.shape, lambda i: (0, 0)),
            pl.BlockSpec(w2.shape, lambda i: (0, 0)),
            pl.BlockSpec(b2.shape, lambda i: (0, 0)),
        ],
        # Lane-dense (1, tb) output blocks along the single (1, B) row.
        out_specs=pl.BlockSpec((1, tb), lambda i: (0, i)),
        compiler_params=pltpu.CompilerParams(
            dimension_semantics=("parallel",)),
        cost_estimate=cost,
    )(state, w1, b1, w2, b2)

    return out_row.reshape(B, 1)


def init_params(key):
    """Deterministic init mimicking nn.Linear default (uniform ±1/sqrt(fan_in))."""
    k1, k2, k3, k4 = jax.random.split(key, 4)
    bound1 = 1.0 / jnp.sqrt(jnp.float32(IN_DIM))
    bound2 = 1.0 / jnp.sqrt(jnp.float32(HIDDEN))
    # w1 stored as (in_features, out_features); w2 kept in PyTorch's (1, H) layout.
    w1 = jax.random.uniform(k1, (IN_DIM, HIDDEN), jnp.float32, -bound1, bound1)
    b1 = jax.random.uniform(k2, (1, HIDDEN), jnp.float32, -bound1, bound1)
    w2 = jax.random.uniform(k3, (1, HIDDEN), jnp.float32, -bound2, bound2)
    b2 = jax.random.uniform(k4, (1, 1), jnp.float32, -bound2, bound2)
    return w1, b1, w2, b2


def _reference(state_f32, w1_f32, b1, w2, b2):
    h = jnp.maximum(
        jnp.dot(state_f32, w1_f32, precision="highest") + b1, 0.0)
    return jnp.dot(h, w2.T, precision="highest") + b2


if __name__ == "__main__":
    key = jax.random.PRNGKey(0)
    k_params, k_state, k_state2 = jax.random.split(key, 3)
    w1, b1, w2, b2 = init_params(k_params)

    # --- small f32 path (single block, matches the module numerics up to f32)
    B = 8
    state = jax.random.normal(k_state, (B, IN_DIM), jnp.float32)
    out = jax.block_until_ready(vfa_forward(state, w1, b1, w2, b2))
    ref = _reference(state, w1, b1, w2, b2)
    assert out.shape == (B, 1)
    assert jnp.allclose(out, ref, atol=1e-4, rtol=1e-4)

    # --- multi-block + partial last block + inner sub-chunk loop exercised at
    #     small scale (B=300 with a 128-row tile and 32-row sub-chunks).
    B2 = 300
    state2 = jax.random.normal(k_state2, (B2, IN_DIM), jnp.float32)
    out2 = jax.block_until_ready(
        vfa_forward(state2, w1, b1, w2, b2, block_b=128, sub_b=32))
    ref2 = _reference(state2, w1, b1, w2, b2)
    assert out2.shape == (B2, 1)
    assert jnp.allclose(out2, ref2, atol=1e-4, rtol=1e-4)

    # --- bf16-input path (recommended default: halves the dominant HBM
    #     stream on all generations); accumulation stays f32.
    state_bf = state.astype(jnp.bfloat16)
    w1_bf = w1.astype(jnp.bfloat16)
    out_bf = jax.block_until_ready(vfa_forward(state_bf, w1_bf, b1, w2, b2))
    ref_bf = _reference(state_bf.astype(jnp.float32),
                        w1_bf.astype(jnp.float32), b1, w2, b2)
    assert jnp.allclose(out_bf, ref_bf, atol=1e-3, rtol=1e-3)

    print("KERNEL_OK")
</pallas_src>

<mosaic_0001>
module attributes {stable_mosaic.version = 11 : i64} {
  func.func @_vfa_kernel(%arg0: i32, %arg1: memref<8x21xf32, #tpu.memory_space<vmem>>, %arg2: memref<21x128xf32, #tpu.memory_space<vmem>>, %arg3: memref<1x128xf32, #tpu.memory_space<vmem>>, %arg4: memref<1x128xf32, #tpu.memory_space<vmem>>, %arg5: memref<1x1xf32, #tpu.memory_space<vmem>>, %arg6: memref<1x8xf32, #tpu.memory_space<vmem>>) attributes {dimension_semantics = [#tpu.dimension_semantics<parallel>], iteration_bounds = array<i64: 1>, scalar_prefetch = 0 : i64, scratch_operands = 0 : i64, tpu.core_type = #tpu.core_type<tc>, window_params = [{transform_indices = @transform_0, window_bounds = array<i64: 8, 21>}, {pipeline_mode = #tpu.pipeline_mode<synchronous>, transform_indices = @transform_1, window_bounds = array<i64: 21, 128>}, {pipeline_mode = #tpu.pipeline_mode<synchronous>, transform_indices = @transform_2, window_bounds = array<i64: 1, 128>}, {pipeline_mode = #tpu.pipeline_mode<synchronous>, transform_indices = @transform_3, window_bounds = array<i64: 1, 128>}, {pipeline_mode = #tpu.pipeline_mode<synchronous>, transform_indices = @transform_4, window_bounds = array<i64: 1, 1>}, {transform_indices = @transform_5, window_bounds = array<i64: 1, 8>}]} {
    %c0 = arith.constant 0 : index
    %c0_0 = arith.constant 0 : index
    %0 = vector.load %arg2[%c0, %c0_0] : memref<21x128xf32, #tpu.memory_space<vmem>>, vector<21x128xf32>
    %c0_1 = arith.constant 0 : index
    %c0_2 = arith.constant 0 : index
    %1 = vector.load %arg3[%c0_1, %c0_2] : memref<1x128xf32, #tpu.memory_space<vmem>>, vector<1x128xf32>
    %c0_3 = arith.constant 0 : index
    %c0_4 = arith.constant 0 : index
    %2 = vector.load %arg4[%c0_3, %c0_4] : memref<1x128xf32, #tpu.memory_space<vmem>>, vector<1x128xf32>
    %c0_5 = arith.constant 0 : index
    %c0_6 = arith.constant 0 : index
    %3 = vector.load %arg5[%c0_5, %c0_6] : memref<1x1xf32, #tpu.memory_space<vmem>>, vector<1x1xf32>
    %c0_7 = arith.constant 0 : index
    %c0_8 = arith.constant 0 : index
    %4 = vector.load %arg1[%c0_7, %c0_8] : memref<8x21xf32, #tpu.memory_space<vmem>>, vector<8x21xf32>
    %cst = arith.constant dense<0.000000e+00> : vector<8x128xf32>
    %5 = tpu.matmul %4, %0, %cst {dimension_numbers = #tpu.dot_dimension_numbers<[1], [0], [0], [1], [0, 0, 1, 1], [], []>} : vector<8x21xf32>, vector<21x128xf32>, vector<8x128xf32> -> vector<8x128xf32>
    %6 = vector.broadcast %1 : vector<1x128xf32> to vector<8x128xf32>
    %7 = arith.addf %5, %6 : vector<8x128xf32>
    %cst_9 = arith.constant 0.000000e+00 : f32
    %8 = vector.broadcast %cst_9 : f32 to vector<8x128xf32>
    %9 = arith.maximumf %7, %8 : vector<8x128xf32>
    %cst_10 = arith.constant dense<0.000000e+00> : vector<1x8xf32>
    %10 = tpu.matmul %2, %9, %cst_10 {dimension_numbers = #tpu.dot_dimension_numbers<[1], [1], [0], [0], [0, 0, 1, 0], [], []>} : vector<1x128xf32>, vector<8x128xf32>, vector<1x8xf32> -> vector<1x8xf32>
    %11 = vector.broadcast %3 : vector<1x1xf32> to vector<1x8xf32>
    %12 = arith.addf %10, %11 : vector<1x8xf32>
    %c0_11 = arith.constant 0 : index
    %c0_12 = arith.constant 0 : index
    %13 = vector.load %arg6[%c0_11, %c0_12] : memref<1x8xf32, #tpu.memory_space<vmem>>, vector<1x8xf32>
    tpu.vector_store %arg6[%c0_11, %c0_12], %12 {strides = array<i32>} : memref<1x8xf32, #tpu.memory_space<vmem>>, vector<1x8xf32>,
    return
  }
  func.func @transform_0(%arg0: i32) -> (i32, i32) {
    %c0_i32 = arith.constant 0 : i32
    %c0_i32_0 = arith.constant 0 : i32
    return %arg0, %c0_i32 : i32, i32
  }
  func.func @transform_1(%arg0: i32) -> (i32, i32) {
    %c0_i32 = arith.constant 0 : i32
    %c0_i32_0 = arith.constant 0 : i32
    %c0_i32_1 = arith.constant 0 : i32
    return %c0_i32, %c0_i32_0 : i32, i32
  }
  func.func @transform_2(%arg0: i32) -> (i32, i32) {
    %c0_i32 = arith.constant 0 : i32
    %c0_i32_0 = arith.constant 0 : i32
    %c0_i32_1 = arith.constant 0 : i32
    return %c0_i32, %c0_i32_0 : i32, i32
  }
  func.func @transform_3(%arg0: i32) -> (i32, i32) {
    %c0_i32 = arith.constant 0 : i32
    %c0_i32_0 = arith.constant 0 : i32
    %c0_i32_1 = arith.constant 0 : i32
    return %c0_i32, %c0_i32_0 : i32, i32
  }
  func.func @transform_4(%arg0: i32) -> (i32, i32) {
    %c0_i32 = arith.constant 0 : i32
    %c0_i32_0 = arith.constant 0 : i32
    %c0_i32_1 = arith.constant 0 : i32
    return %c0_i32, %c0_i32_0 : i32, i32
  }
  func.func @transform_5(%arg0: i32) -> (i32, i32) {
    %c0_i32 = arith.constant 0 : i32
    %c0_i32_0 = arith.constant 0 : i32
    return %c0_i32, %arg0 : i32, i32
  }
}

</mosaic_0001>

<bundles_post_ra>
// kernel: tpu_custom_call.1
= control target key start
LH: loop header
LB: loop body
LE: loop exit
PB: predicated region body
PF: predicated region fallthrough
CT: control target
= control target key end

     0   :  { %s280_s0 = inlined_call_operand.hbm [shape: f32[8,21], index: 0, kind: input, shape index: {}]   ;;  %s281_s1 = inlined_call_operand.hbm [shape: f32[21,128], index: 1, kind: input, shape index: {}]   ;;  %s282_s2 = inlined_call_operand.vmem [shape: f32[1,128], index: 2, kind: input, shape index: {}]   ;;  %s283_s3 = inlined_call_operand.vmem [shape: f32[1,128], index: 3, kind: input, shape index: {}]   ;;  %s284_s4 = inlined_call_operand.<no memory space> [shape: f32[1,1], index: 4, kind: input, shape index: {}]   ;;  %s285_s5 = inlined_call_operand.hbm [shape: f32[1,8], index: 5, kind: output, shape index: {}]  }
   0x1   :  { %v10_v0 = vstv %s284_s4 }
   0x2   :  { %11 = vst [vmem:[#allocation2] sm:$0x1] %v10_v0 }
   0x3   :  { %12 = vsyncpa [#allocation4], 0 }
   0x4   :  { %13 = vsyncpa [#allocation7], 0 }
   0x5   :  { %14 = vsyncpa [#allocation5], 0  ;;  %s20_s22 = sshll.u32 %s280_s0, 4  ;;  %s226_s23 = smov [#allocation3]   ;;  %s21_s22 = int_to_ptr.hbm [resolvable:$true] %s20_s22 }
   0x6   :  { %s22_s24 = sshll.u32 %s226_s23, 4  ;;  %s30_s27 = sshll.u32 %s281_s1, 4  ;;  %s23_s24 = int_to_ptr.vmem [resolvable:$true] %s22_s24  ;;  %s31_s27 = int_to_ptr.hbm [resolvable:$true] %s30_s27 }
   0x7   :  { %25 = dma.hbm_to_vmem [thread:$0]  %s21_s22, 128, %s23_s24, [#allocation4]  }
   0x8   :  { %s227_s28 = smov [#allocation6]   ;;  %s228_s29 = smov 128  }
   0x9   :  { %s32_s4 = sshll.u32 %s227_s28, 4  ;;  %s229_s30 = smov 8   ;;  %s33_s4 = int_to_ptr.vmem [resolvable:$true] %s32_s4 }
   0xa   :  { %38 = dma.hbm_to_vmem [thread:$0]  %s31_s27, 384, %s33_s4, [#allocation7], %s228_s29, %s228_s29, %s229_s30  }
   0xb   :  { %220 = dma.done.wait [#allocation4], 128  }
   0xc   :  { %221 = vsyncadd [#allocation4], 4294967168 }
   0xd   :  { %222 = dma.done.wait [#allocation7], 384  }
   0xe   :  { %223 = vsyncadd [#allocation7], 4294966912  ;;  %vm67_vm0 = vcmask 1044480   ;;  %v55_v1 = vld [vmem:[#allocation6 + $0x10] sm:$0x1f]  ;;  %v54_v2 = vld [vmem:[#allocation6 + $0x8] sm:$0xff] }
   0xf   :  { %138 = vmatpush.msk.msra.mxu0 %vm67_vm0, %v55_v1  ;;  %v53_v3 = vld [vmem:[#allocation6] sm:$0xff]  ;;  %v59_v4 = vld [vmem:[#allocation3] sm:$0xff]  ;;  %vm63_vm1 = vcmask 171008   ;;  %v58_v5 = vld [vmem:[#allocation2] sm:$0x1]  ;;  %v230_v6 = vmov 0  }
  0x10   :  { %146 = vset.pattern.permute.xlu0 %v230_v6  ;;  %v147_v7 = vld [vmem:[%s282_s2] ss:$0 sm:$0xff]  ;;  %s231_s8 = smov [#allocation8]   ;;  %s127_s12 = sshll.u32 %s285_s5, 4  ;;  %vm118_vm2 = vcmask 57344   ;;  %s128_s12 = int_to_ptr.hbm [resolvable:$true] %s127_s12 }
  0x11   :  { %85 = vmatpush.msra.mxu0 %v54_v2  ;;  %94 = vperm.xlu0 %146, %v58_v5   ;;  %v57_v11 = vld [vmem:[%s283_s3] sm:$0x1]  ;;  %s125_s9 = sshll.u32 %s231_s8, 4  ;;  %s126_s9 = int_to_ptr.vmem [resolvable:$true] %s125_s9 }
  0x13   :  { %86 = vmatpush.msra.mxu0 %v53_v3 }
  0x14   :  { %139 = vmatmul.msk.f32.vlgmr.msra.gmra.mxu0 %vm63_vm1, %v59_v4 }
  0x83   :  { %v95_v12 = vpop.permute.xlu0 %94 }
  0x84   :  { %v97_v13 = vperm.slane %v95_v12, 0 }
  0x91   :  { %v88_v8 = vpop.f32.mrf.mxu0 }
  0x92   :  { %v89_v9 = vadd.f32 %v147_v7, %v88_v8 }
  0x94   :  { %v91_v10 = vmax.f32 %v89_v9, 0.0 }
  0x96   :  { %113 = vmatpush.xpose.msra.mxu1 %v91_v10 }
  0x99   :  { %114 = vmatmul.f32.vlgmr.msra.gmra.mxu1 %v57_v11 }
 0x116   :  { %v115_v14 = vpop.f32.mrf.mxu1 }
 0x117   :  { %v116_v15 = vadd.f32 %v115_v14, %v97_v13 }
 0x119   :  { %119 = vst.msk [vmem:[#allocation8] sm:$0x1] %vm118_vm2, %v116_v15 }
 0x11a   :  { %130 = dma.vmem_to_hbm [thread:$0]  %s126_s9, 16, %s128_s12, [#allocation5]  }
 0x11b   :  { %224 = dma.done.wait [#allocation5], 16  }
 0x11c   :  { %225 = vsyncadd [#allocation5], 4294967280 }
 0x11d   :  { %135 = vsyncpa [#allocation4], 1 }
 0x11e   :  { %136 = vsyncpa [#allocation7], 1 }
 0x11f   :  { %137 = vsyncpa [#allocation5], 1 }

</bundles_post_ra>
